<compile_context>
chip_gen: v7x
topology: tpu7x:2x2x1
jax: 0.10.0
libtpu: 0.0.40
codegen_flags: <defaults>
</compile_context>

<pallas_src>
import functools
from typing import NamedTuple

import jax
import jax.numpy as jnp
from jax.experimental import pallas as pl
from jax.experimental.pallas import tpu as pltpu

_BN_EPS = 1e-5
_HIDDEN = 16                   # MLP2 always uses 16 hidden channels per block
_ACT_DTYPE = jnp.bfloat16      # activation / weight streaming dtype


class BlockMeta(NamedTuple):
    """Static (hashable) per-block row offsets into the packed weight/bias slabs."""
    c_prev: int
    c_out: int
    w1_r: int   # row offset of w1 / t1
    w2_r: int   # row offset of w2 / t2


# ----------------------------- Pallas kernel --------------------------------

def _make_fused_kernel(block_meta):
    """Fused MLP2 stack over one (c_in, tile_n) column tile.

    Ref layout:
      x_ref : (c_in, tile_n)          bf16 activations
      w_ref : (rows, w_cols)          packed conv weights (BN scale folded), bf16
      b_ref : (rows, 1)               packed biases (BN shift folded), f32
      o_ref : (c_out_final, tile_n)   bf16 output
    """

    def kernel(x_ref, w_ref, b_ref, o_ref):
        x = x_ref[...]                                        # (c_in, tile_n)
        for m in block_meta:                                  # unrolled at trace time
            w1 = w_ref[m.w1_r:m.w1_r + _HIDDEN, 0:m.c_prev]   # (16, c_prev) bf16
            t1 = b_ref[m.w1_r:m.w1_r + _HIDDEN, :]            # (16, 1) f32
            w2 = w_ref[m.w2_r:m.w2_r + m.c_out, 0:_HIDDEN]    # (c_out, 16) bf16
            t2 = b_ref[m.w2_r:m.w2_r + m.c_out, :]            # (c_out, 1) f32
            # conv1x1 (BN scale folded in) -> bias -> ReLU.  MXU runs bf16 with f32
            # accumulation; elementwise math stays in f32 (v5e has no bf16 VPU).
            h = jnp.dot(w1, x, preferred_element_type=jnp.float32) + t1
            h = jnp.maximum(h, 0.0).astype(x_ref.dtype)
            y = jnp.dot(w2, h, preferred_element_type=jnp.float32) + t2
            x = jnp.maximum(y, 0.0).astype(x_ref.dtype)
        o_ref[...] = x.astype(o_ref.dtype)

    return kernel


def _mlp2_pallas(x_bcn, w_slab, b_slab, block_meta, tile_n):
    """x_bcn: (B, C_in, N) -> (B, C_out_final, N), N = H*W."""
    bsz, c_in, n = x_bcn.shape
    c_out = block_meta[-1].c_out
    grid = (bsz, pl.cdiv(n, tile_n))   # partial last column tile is masked by Pallas

    return pl.pallas_call(
        _make_fused_kernel(block_meta),
        out_shape=jax.ShapeDtypeStruct((bsz, c_out, n), x_bcn.dtype),
        grid_spec=pltpu.PrefetchScalarGridSpec(
            num_scalar_prefetch=0,
            grid=grid,
            in_specs=[
                pl.BlockSpec((pl.Squeezed(), c_in, tile_n), lambda b, j: (b, 0, j)),
                pl.BlockSpec(w_slab.shape, lambda b, j: (0, 0)),   # VMEM-resident
                pl.BlockSpec(b_slab.shape, lambda b, j: (0, 0)),   # VMEM-resident
            ],
            out_specs=pl.BlockSpec((pl.Squeezed(), c_out, tile_n),
                                   lambda b, j: (b, 0, j)),
        ),
        compiler_params=pltpu.CompilerParams(
            dimension_semantics=("parallel", "parallel")),
    )(x_bcn, w_slab, b_slab)


# --------------------------- parameter construction -------------------------

def _fold_conv_bn_scale_shift(bias, gamma, beta, mean, var):
    """Per-output-channel (scale, shift) for inference-mode Conv+BN fold."""
    inv_std = 1.0 / jnp.sqrt(var + _BN_EPS)
    scale = gamma * inv_std
    shift = (bias - mean) * scale + beta
    return scale, shift


def make_mlp2_params(key, in_channels, out_channels):
    """Deterministic synthetic parameters mimicking MLP2.__init__ shapes.
    BN scale is folded into the conv weight; BN shift folded into the bias."""
    params = []
    channels = [in_channels] + list(out_channels)
    for i in range(1, len(channels)):
        c_prev, c_out = channels[i - 1], channels[i]
        key, *ks = jax.random.split(key, 11)
        w1 = jax.random.normal(ks[0], (_HIDDEN, c_prev), jnp.float32) * 0.2
        b1 = jax.random.normal(ks[1], (_HIDDEN,), jnp.float32) * 0.1
        g1 = 1.0 + 0.1 * jax.random.normal(ks[2], (_HIDDEN,), jnp.float32)
        be1 = 0.1 * jax.random.normal(ks[3], (_HIDDEN,), jnp.float32)
        m1 = 0.1 * jax.random.normal(ks[4], (_HIDDEN,), jnp.float32)
        v1 = jnp.abs(1.0 + 0.1 * jax.random.normal(ks[5], (_HIDDEN,), jnp.float32))
        w2 = jax.random.normal(ks[6], (c_out, _HIDDEN), jnp.float32) * 0.2
        b2 = jax.random.normal(ks[7], (c_out,), jnp.float32) * 0.1
        g2 = 1.0 + 0.1 * jax.random.normal(ks[8], (c_out,), jnp.float32)
        be2 = 0.1 * jax.random.normal(ks[9], (c_out,), jnp.float32)
        m2 = jnp.zeros((c_out,), jnp.float32)
        v2 = jnp.ones((c_out,), jnp.float32)

        s1, t1 = _fold_conv_bn_scale_shift(b1, g1, be1, m1, v1)
        s2, t2 = _fold_conv_bn_scale_shift(b2, g2, be2, m2, v2)
        params.append(dict(w1f=w1 * s1[:, None], t1=t1,
                           w2f=w2 * s2[:, None], t2=t2))
    return params


def _ceil_to(x, m):
    return (x + m - 1) // m * m


def pack_params(params, act_dtype=_ACT_DTYPE):
    """Pack the whole stack into one bf16 weight slab + one f32 bias slab."""
    max_w = max(max(p["w1f"].shape[1], _HIDDEN) for p in params)
    w_pieces, b_pieces, meta = [], [], []
    off = 0
    for p in params:
        c_prev = p["w1f"].shape[1]
        c_out = p["w2f"].shape[0]
        r1 = _ceil_to(_HIDDEN, 8)   # sublane-aligned row offsets
        r2 = _ceil_to(c_out, 8)
        w1p = jnp.zeros((r1, max_w), jnp.float32).at[:_HIDDEN, :c_prev].set(p["w1f"])
        t1p = jnp.zeros((r1, 1), jnp.float32).at[:_HIDDEN, 0].set(p["t1"])
        w2p = jnp.zeros((r2, max_w), jnp.float32).at[:c_out, :_HIDDEN].set(p["w2f"])
        t2p = jnp.zeros((r2, 1), jnp.float32).at[:c_out, 0].set(p["t2"])
        w_pieces += [w1p, w2p]
        b_pieces += [t1p, t2p]
        meta.append(BlockMeta(c_prev=c_prev, c_out=c_out, w1_r=off, w2_r=off + r1))
        off += r1 + r2
    w_slab = jnp.concatenate(w_pieces, axis=0).astype(act_dtype)
    b_slab = jnp.concatenate(b_pieces, axis=0).astype(jnp.float32)
    return w_slab, b_slab, tuple(meta)


# ------------------------------- full forward -------------------------------

@functools.partial(jax.jit, static_argnames=("block_meta", "tile_n"))
def mlp2_forward(x_nchw, w_slab, b_slab, block_meta, *, tile_n=2048):
    """MLP2 forward. x_nchw: (B, C, H, W) -> (B, C_out_final, H, W) in bf16."""
    b, c, h, w = x_nchw.shape
    hw = h * w
    # Free contiguous view (NCHW is already channel-major): no HBM transpose pass.
    x_bcn = x_nchw.astype(_ACT_DTYPE).reshape(b, c, hw)
    # Column tile: largest multiple of 128 lanes <= min(tile_n, HW); if HW itself is
    # not 128-aligned fall back to the full row (full-dim blocks are always legal).
    if hw % 128 == 0:
        tn = max(128, (min(tile_n, hw) // 128) * 128)
    else:
        tn = hw
    y_bcn = _mlp2_pallas(x_bcn, w_slab, b_slab, block_meta, tn)
    return y_bcn.reshape(b, y_bcn.shape[1], h, w)


def mlp2_forward_ref(x_nchw, params, act_dtype=_ACT_DTYPE):
    """Plain-JAX reference mirroring the kernel's bf16/f32 numerics."""
    b, c, h, w = x_nchw.shape
    x = x_nchw.astype(act_dtype).reshape(b, c, h * w)
    for p in params:
        w1 = p["w1f"].astype(act_dtype)
        w2 = p["w2f"].astype(act_dtype)
        hd = jnp.einsum("oc,bcn->bon", w1, x, preferred_element_type=jnp.float32)
        hd = jnp.maximum(hd + p["t1"].reshape(1, -1, 1), 0.0).astype(act_dtype)
        y = jnp.einsum("oc,bcn->bon", w2, hd, preferred_element_type=jnp.float32)
        x = jnp.maximum(y + p["t2"].reshape(1, -1, 1), 0.0).astype(act_dtype)
    return x.reshape(b, x.shape[1], h, w)


# ----------------------------------- main ------------------------------------

if __name__ == "__main__":
    # MLP2(in_channels=4, out_channels=[32, 8], activation='relu', dropout=0)
    in_channels = 4
    out_channels = [32, 8]

    key = jax.random.PRNGKey(0)
    kx, kp = jax.random.split(key)

    x = jax.random.normal(kx, (2, in_channels, 16, 16), jnp.float32)  # NCHW
    params = make_mlp2_params(kp, in_channels, out_channels)
    w_slab, b_slab, meta = pack_params(params)

    # Demo: HW = 256 -> tile_n clamps to 256, grid = (2, 1).  For real workloads keep
    # tile_n at 2048-8192 so each v7x TensorCore gets >= 4 pipelined steps.
    y = mlp2_forward(x, w_slab, b_slab, block_meta=meta, tile_n=2048)
    y = jax.block_until_ready(y)

    y_ref = mlp2_forward_ref(x, params)
    assert y.shape == (2, out_channels[-1], 16, 16), y.shape
    assert jnp.allclose(y.astype(jnp.float32), y_ref.astype(jnp.float32),
                        atol=2e-2, rtol=2e-2), "mismatch vs reference"

    print("KERNEL_OK")
</pallas_src>

<mosaic_0001>
module attributes {stable_mosaic.version = 11 : i64} {
  func.func @kernel(%arg0: i32, %arg1: i32, %arg2: memref<1x4x256xbf16, #tpu.memory_space<vmem>>, %arg3: memref<72x32xbf16, #tpu.memory_space<vmem>>, %arg4: memref<72x1xf32, #tpu.memory_space<vmem>>, %arg5: memref<1x8x256xbf16, #tpu.memory_space<vmem>>) attributes {dimension_semantics = [#tpu.dimension_semantics<parallel>, #tpu.dimension_semantics<parallel>], iteration_bounds = array<i64: 2, 1>, scalar_prefetch = 0 : i64, scratch_operands = 0 : i64, tpu.core_type = #tpu.core_type<tc>, window_params = [{transform_indices = @transform_0, window_bounds = array<i64: 1, 4, 256>}, {pipeline_mode = #tpu.pipeline_mode<synchronous>, transform_indices = @transform_1, window_bounds = array<i64: 72, 32>}, {pipeline_mode = #tpu.pipeline_mode<synchronous>, transform_indices = @transform_2, window_bounds = array<i64: 72, 1>}, {transform_indices = @transform_3, window_bounds = array<i64: 1, 8, 256>}]} {
    %c0 = arith.constant 0 : index
    %c0_0 = arith.constant 0 : index
    %c0_1 = arith.constant 0 : index
    %0 = vector.load %arg2[%c0, %c0_0, %c0_1] : memref<1x4x256xbf16, #tpu.memory_space<vmem>>, vector<1x4x256xbf16>
    %1 = vector.shape_cast %0 : vector<1x4x256xbf16> to vector<4x256xbf16>
    %c0_2 = arith.constant 0 : index
    %c0_3 = arith.constant 0 : index
    %2 = vector.load %arg3[%c0_2, %c0_3] : memref<72x32xbf16, #tpu.memory_space<vmem>>, vector<16x4xbf16>
    %c0_4 = arith.constant 0 : index
    %c0_5 = arith.constant 0 : index
    %3 = vector.load %arg4[%c0_4, %c0_5] : memref<72x1xf32, #tpu.memory_space<vmem>>, vector<16x1xf32>
    %c16 = arith.constant 16 : index
    %c0_6 = arith.constant 0 : index
    %4 = vector.load %arg3[%c16, %c0_6] : memref<72x32xbf16, #tpu.memory_space<vmem>>, vector<32x16xbf16>
    %c16_7 = arith.constant 16 : index
    %c0_8 = arith.constant 0 : index
    %5 = vector.load %arg4[%c16_7, %c0_8] : memref<72x1xf32, #tpu.memory_space<vmem>>, vector<32x1xf32>
    %cst = arith.constant dense<0.000000e+00> : vector<16x256xf32>
    %6 = tpu.matmul %2, %1, %cst {dimension_numbers = #tpu.dot_dimension_numbers<[1], [0], [0], [1], [0, 0, 1, 1], [], []>} : vector<16x4xbf16>, vector<4x256xbf16>, vector<16x256xf32> -> vector<16x256xf32>
    %7 = vector.broadcast %3 : vector<16x1xf32> to vector<16x256xf32>
    %8 = arith.addf %6, %7 : vector<16x256xf32>
    %cst_9 = arith.constant 0.000000e+00 : f32
    %9 = vector.broadcast %cst_9 : f32 to vector<16x256xf32>
    %10 = arith.maximumf %8, %9 : vector<16x256xf32>
    %11 = arith.truncf %10 : vector<16x256xf32> to vector<16x256xbf16>
    %cst_10 = arith.constant dense<0.000000e+00> : vector<32x256xf32>
    %12 = tpu.matmul %4, %11, %cst_10 {dimension_numbers = #tpu.dot_dimension_numbers<[1], [0], [0], [1], [0, 0, 1, 1], [], []>} : vector<32x16xbf16>, vector<16x256xbf16>, vector<32x256xf32> -> vector<32x256xf32>
    %13 = vector.broadcast %5 : vector<32x1xf32> to vector<32x256xf32>
    %14 = arith.addf %12, %13 : vector<32x256xf32>
    %cst_11 = arith.constant 0.000000e+00 : f32
    %15 = vector.broadcast %cst_11 : f32 to vector<32x256xf32>
    %16 = arith.maximumf %14, %15 : vector<32x256xf32>
    %17 = arith.truncf %16 : vector<32x256xf32> to vector<32x256xbf16>
    %c48 = arith.constant 48 : index
    %c0_12 = arith.constant 0 : index
    %18 = vector.load %arg3[%c48, %c0_12] : memref<72x32xbf16, #tpu.memory_space<vmem>>, vector<16x32xbf16>
    %c48_13 = arith.constant 48 : index
    %c0_14 = arith.constant 0 : index
    %19 = vector.load %arg4[%c48_13, %c0_14] : memref<72x1xf32, #tpu.memory_space<vmem>>, vector<16x1xf32>
    %c64 = arith.constant 64 : index
    %c0_15 = arith.constant 0 : index
    %20 = vector.load %arg3[%c64, %c0_15] : memref<72x32xbf16, #tpu.memory_space<vmem>>, vector<8x16xbf16>
    %c64_16 = arith.constant 64 : index
    %c0_17 = arith.constant 0 : index
    %21 = vector.load %arg4[%c64_16, %c0_17] : memref<72x1xf32, #tpu.memory_space<vmem>>, vector<8x1xf32>
    %cst_18 = arith.constant dense<0.000000e+00> : vector<16x256xf32>
    %22 = tpu.matmul %18, %17, %cst_18 {dimension_numbers = #tpu.dot_dimension_numbers<[1], [0], [0], [1], [0, 0, 1, 1], [], []>} : vector<16x32xbf16>, vector<32x256xbf16>, vector<16x256xf32> -> vector<16x256xf32>
    %23 = vector.broadcast %19 : vector<16x1xf32> to vector<16x256xf32>
    %24 = arith.addf %22, %23 : vector<16x256xf32>
    %cst_19 = arith.constant 0.000000e+00 : f32
    %25 = vector.broadcast %cst_19 : f32 to vector<16x256xf32>
    %26 = arith.maximumf %24, %25 : vector<16x256xf32>
    %27 = arith.truncf %26 : vector<16x256xf32> to vector<16x256xbf16>
    %cst_20 = arith.constant dense<0.000000e+00> : vector<8x256xf32>
    %28 = tpu.matmul %20, %27, %cst_20 {dimension_numbers = #tpu.dot_dimension_numbers<[1], [0], [0], [1], [0, 0, 1, 1], [], []>} : vector<8x16xbf16>, vector<16x256xbf16>, vector<8x256xf32> -> vector<8x256xf32>
    %29 = vector.broadcast %21 : vector<8x1xf32> to vector<8x256xf32>
    %30 = arith.addf %28, %29 : vector<8x256xf32>
    %cst_21 = arith.constant 0.000000e+00 : f32
    %31 = vector.broadcast %cst_21 : f32 to vector<8x256xf32>
    %32 = arith.maximumf %30, %31 : vector<8x256xf32>
    %33 = arith.truncf %32 : vector<8x256xf32> to vector<8x256xbf16>
    %c0_22 = arith.constant 0 : index
    %c0_23 = arith.constant 0 : index
    %c0_24 = arith.constant 0 : index
    %34 = vector.load %arg5[%c0_22, %c0_23, %c0_24] : memref<1x8x256xbf16, #tpu.memory_space<vmem>>, vector<1x8x256xbf16>
    %35 = vector.shape_cast %34 : vector<1x8x256xbf16> to vector<8x256xbf16>
    %36 = vector.shape_cast %33 : vector<8x256xbf16> to vector<1x8x256xbf16>
    tpu.vector_store %arg5[%c0_22, %c0_23, %c0_24], %36 {strides = array<i32>} : memref<1x8x256xbf16, #tpu.memory_space<vmem>>, vector<1x8x256xbf16>,
    return
  }
  func.func @transform_0(%arg0: i32, %arg1: i32) -> (i32, i32, i32) {
    %c0_i32 = arith.constant 0 : i32
    %c0_i32_0 = arith.constant 0 : i32
    return %arg0, %c0_i32, %arg1 : i32, i32, i32
  }
  func.func @transform_1(%arg0: i32, %arg1: i32) -> (i32, i32) {
    %c0_i32 = arith.constant 0 : i32
    %c0_i32_0 = arith.constant 0 : i32
    %c0_i32_1 = arith.constant 0 : i32
    return %c0_i32, %c0_i32_0 : i32, i32
  }
  func.func @transform_2(%arg0: i32, %arg1: i32) -> (i32, i32) {
    %c0_i32 = arith.constant 0 : i32
    %c0_i32_0 = arith.constant 0 : i32
    %c0_i32_1 = arith.constant 0 : i32
    return %c0_i32, %c0_i32_0 : i32, i32
  }
  func.func @transform_3(%arg0: i32, %arg1: i32) -> (i32, i32, i32) {
    %c0_i32 = arith.constant 0 : i32
    %c0_i32_0 = arith.constant 0 : i32
    return %arg0, %c0_i32, %arg1 : i32, i32, i32
  }
}

</mosaic_0001>

<bundles_post_ra>
// kernel: mlp2_forward.1
= control target key start
LH: loop header
LB: loop body
LE: loop exit
PB: predicated region body
PF: predicated region fallthrough
CT: control target
= control target key end

     0   :  { %s733_s12 = smov 0   ;;  %s735_s13 = smov 0   ;;  %s822_s0 = inlined_call_operand.vmem [shape: bf16[2,4,256], index: 0, kind: input, shape index: {}]   ;;  %s823_s1 = inlined_call_operand.vmem [shape: bf16[72,32], index: 1, kind: input, shape index: {}]   ;;  %s824_s2 = inlined_call_operand.vmem [shape: f32[72,1], index: 2, kind: input, shape index: {}]   ;;  %s825_s3 = inlined_call_operand.vmem [shape: bf16[2,8,256], index: 3, kind: output, shape index: {}]  }
   0x1   :  { %s737_s14 = smov 0  }
   0x2 LB: > { %s25_s15 = sadd.s32 1, %s706_s13  ;;  %p635_p0 = scmp.ge.s32.totalorder %s710_s14, 1  ;;  %s710_s14 = sphi %s737_s14, %s13_s14   ;;  %s706_s13 = sphi %s735_s13, %s827_s13   ;;  %s702_s12 = sphi %s733_s12, %s826_s12  }
   0x3   : > { %p27_p1 = scmp.ge.s32.totalorder %s25_s15, 2  ;;  %p158_p2 = scmp.lt.s32.totalorder %s710_s14, 3 }
   0x5   : > { %s829_s15 = smov (%p27_p1, %s25_s15), 0  ;;  %p159_p3 = pnand %p635_p0, %p158_p2 }
   0x6   : > { %p191_p4 = scmp.lt.s32.totalorder (!%p159_p3), %s702_s12, 1  ;;  %v712_v0 = vmov (!%p159_p3), 0   ;;  %v214_v1 = vld [vmem:[%s824_s2] sm:$0xff] (!%p159_p3)  ;;  %v215_v2 = vld [vmem:[%s824_s2 + $0x8] sm:$0xff] (!%p159_p3)  ;;  %vm252_vm0 = vcmask (!%p159_p3), 1041408   ;;  %vm248_vm1 = vcmask (!%p159_p3), 31744  }
   0x7   : > { %162 = sbr.rel (%p159_p3) target bundleno = 927 (0x39f), region = 32  ;;  %291 = vmatprep.mubr.bf16.mxu0 (!%p159_p3), %v712_v0  ;;  %682 = vset.pattern.permute.xlu0 (!%p159_p3), %v712_v0  ;;  %v222_v6 = vld [vmem:[%s824_s2 + $0x20] sm:$0xff] (!%p159_p3)  ;;  %v412_v8 = vld [vmem:[%s824_s2 + $0x30] sm:$0xff] (!%p159_p3)  ;;  %v221_v11 = vld [vmem:[%s824_s2 + $0x18] sm:$0xff] (!%p159_p3)  ;;  %vm338_vm2 = vcmask (!%p159_p3), 130048   ;;  %vm431_vm3 = vcmask (!%p159_p3), 261120  }
   0x8   : > { %226 = vperm.xlu0 (!%p159_p3), %682, %v214_v1   ;;  %377 = vmatprep.mubr.bf16.mxu1 (!%p159_p3), %v712_v0  ;;  %v684_v7 = vld [vmem:[%s823_s1] sm:$0xff] (!%p159_p3)   ;;  %v220_v10 = vld [vmem:[%s824_s2 + $0x10] sm:$0xff] (!%p159_p3)  ;;  %v223_v12 = vld [vmem:[%s824_s2 + $0x28] sm:$0xff] (!%p159_p3) }
   0x9   : > { %683 = vset.pattern.permute.xlu1 (!%p159_p3), %v712_v0  ;;  %v415_v9 = vld [vmem:[%s824_s2 + $0x40] sm:$0xff] (!%p159_p3)  ;;  %v413_v13 = vld [vmem:[%s824_s2 + $0x38] sm:$0xff] (!%p159_p3)  ;;  %v685_v30 = vld [vmem:[%s823_s1 + $0x8] sm:$0xff] (!%p159_p3)  }
   0xa   : > { %310 = vperm.xlu1 (!%p159_p3), %683, %v220_v10   ;;  %v686_v31 = vld [vmem:[%s823_s1 + $0x10] sm:$0xff] (!%p159_p3)   ;;  %v687_v1 = vld [vmem:[%s823_s1 + $0x18] sm:$0xff] (!%p159_p3)  }
   0xc   : > { %231 = vperm.xlu0 (!%p159_p3), %682, %v215_v2  }
   0xe   : > { %s831_s12 = smov (!%p191_p4, %s702_s12), 1  ;;  %315 = vperm.xlu1 %683, %v221_v11  }
   0xf   : > { %s654_s20 = sshll.u32 %s831_s12, 2  ;;  %s655_s25 = sshll.u32 %s831_s12, 3 }
  0x10   : > { %s198_s23 = scalar_lea.vmem %s822_s0, %s654_s20  ;;  %320 = vperm.xlu0 %682, %v222_v6   ;;  %s208_s28 = scalar_lea.vmem %s825_s3, %s655_s25 }
  0x11   : > { %v641_v3 = vld.sshfl [vmem:[%s198_s23] sm:$0x33 pattern:$0x76325410] }
  0x12   : > { %v247_v4 = vcombine.high %v641_v3, %v641_v3  ;;  %v254_v5 = vsel %vm252_vm0, %v641_v3, 0  ;;  %325 = vperm.xlu1 %683, %v223_v12  }
  0x14   : > { %642 = vmatprep.subr.msk.bf16.mxu0 %vm252_vm0, %v247_v4  ;;  %418 = vperm.xlu0 %682, %v412_v8  }
  0x15   : > { %260 = vmatpush1.bf16.msra.mxu0 %v254_v5 }
  0x16   : > { %423 = vperm.xlu1 %683, %v413_v13  }
  0x18   : > { %643 = vmatmul.mubr.msk.bf16.vlgmr.msra.gmra.mrb[0].mxu0 %vm248_vm1, %v684_v7  ;;  %486 = vperm.xlu0 %682, %v415_v9  }
  0x19   : > { %467 = vmatprep.mubr.bf16.mxu0 %v712_v0 }
  0x87   : > { %v227_v14 = vpop.permute.xlu0 %226 }
  0x89   : > { %v311_v32 = vpop.permute.xlu1 %310 }
  0x8b   : > { %v232_v18 = vpop.permute.xlu0 %231 }
  0x8d   : > { %v316_v36 = vpop.permute.xlu1 %315 }
  0x8f   : > { %v321_v47 = vpop.permute.xlu0 %320 }
  0x91   : > { %v326_v52 = vpop.permute.xlu1 %325 }
  0x93   : > { %v419_v2 = vpop.permute.xlu0 %418 }
  0x95   : > { %v424_v6 = vpop.permute.xlu1 %423 }
  0xeb   : > { %v293_v15 = vpop.f32.mrb[0].mxu0 }
  0xec   : > { %v294_v16 = vadd.f32 %v293_v15, %v227_v14  ;;  %v295_v17 = vpop.f32.mrb[1].mxu0 }
  0xed   : > { %v296_v19 = vadd.f32 %v295_v17, %v227_v14  ;;  %v297_v20 = vpop.f32.mrb[2].mxu0 }
  0xee   : > { %v298_v21 = vadd.f32 %v297_v20, %v232_v18  ;;  %v299_v22 = vpop.f32.mrb[3].mxu0  ;;  %v302_v24 = vmax.f32 %v294_v16, 0.0 }
  0xef   : > { %v300_v23 = vadd.f32 %v299_v22, %v232_v18  ;;  %v303_v26 = vmax.f32 %v296_v19, 0.0  ;;  %v487_v18 = vpop.permute.xlu0 %486 }
  0xf0   : > { %v304_v25 = vmax.f32 %v298_v21, 0.0 }
  0xf1   : > { %v305_v27 = vmax.f32 %v300_v23, 0.0 }
  0xf2   : > { %v306_v28 = vpack.c.bf16 %v304_v25, %v302_v24 }
  0xf3   : > { %v307_v29 = vpack.c.bf16 %v305_v27, %v303_v26 }
  0xf5   : > { %345 = vmatprep.subr.bf16.mxu1 %v307_v29 }
  0xf6   : > { %346 = vmatpush1.bf16.msra.mxu1 %v306_v28 }
  0xf9   : > { %646 = vmatmul.mubr.msk.bf16.vlgmr.msra.gmra.mrb[0].mxu1 %vm338_vm2, %v685_v30 }
  0xfa   : > { %387 = vmatprep.mubr.bf16.mxu1 %v712_v0 }
 0x101   : > { %647 = vmatmul.mubr.msk.bf16.gmra.mrb[4].mxu1 %vm338_vm2, %v686_v31 }
 0x1cc   : > { %v379_v33 = vpop.f32.mrb[0].mxu1 }
 0x1cd   : > { %v380_v34 = vadd.f32 %v379_v33, %v311_v32  ;;  %v381_v35 = vpop.f32.mrb[1].mxu1 }
 0x1ce   : > { %v382_v37 = vadd.f32 %v381_v35, %v311_v32  ;;  %v383_v38 = vpop.f32.mrb[2].mxu1 }
 0x1cf   : > { %v384_v39 = vadd.f32 %v383_v38, %v316_v36  ;;  %v385_v40 = vpop.f32.mrb[3].mxu1  ;;  %v398_v42 = vmax.f32 %v380_v34, 0.0 }
 0x1d0   : > { %v386_v41 = vadd.f32 %v385_v40, %v316_v36  ;;  %v399_v44 = vmax.f32 %v382_v37, 0.0 }
 0x1d1   : > { %v400_v43 = vmax.f32 %v384_v39, 0.0 }
 0x1d2   : > { %v401_v45 = vmax.f32 %v386_v41, 0.0 }
 0x1d3   : > { %v406_v46 = vpack.c.bf16 %v400_v43, %v398_v42 }
 0x1d4   : > { %v407_v48 = vpack.c.bf16 %v401_v45, %v399_v44  ;;  %v389_v49 = vpop.f32.mrb[4].mxu1 }
 0x1d5   : > { %v390_v50 = vadd.f32 %v389_v49, %v321_v47  ;;  %v391_v51 = vpop.f32.mrb[5].mxu1 }
 0x1d6   : > { %v392_v53 = vadd.f32 %v391_v51, %v321_v47  ;;  %v393_v54 = vpop.f32.mrb[6].mxu1  ;;  %435 = vmatprep.subr.bf16.mxu0 %v407_v48 }
 0x1d7   : > { %v394_v55 = vadd.f32 %v393_v54, %v326_v52  ;;  %v395_v56 = vpop.f32.mrb[7].mxu1  ;;  %436 = vmatpush1.bf16.msra.mxu0 %v406_v46  ;;  %v402_v58 = vmax.f32 %v390_v50, 0.0 }
 0x1d8   : > { %v396_v57 = vadd.f32 %v395_v56, %v326_v52  ;;  %v403_v60 = vmax.f32 %v392_v53, 0.0 }
 0x1d9   : > { %v404_v59 = vmax.f32 %v394_v55, 0.0 }
 0x1da   : > { %v405_v61 = vmax.f32 %v396_v57, 0.0 }
 0x1db   : > { %v408_v62 = vpack.c.bf16 %v404_v59, %v402_v58 }
 0x1dc   : > { %v409_v63 = vpack.c.bf16 %v405_v61, %v403_v60 }
 0x1de   : > { %437 = vmatprep.subr.bf16.mxu0 %v409_v63 }
 0x1df   : > { %438 = vmatpush1.bf16.msra.mxu0 %v408_v62 }
 0x1e2   : > { %649 = vmatmul.mubr.msk.bf16.vlgmr.msra.gmra.mrb[4].mxu0 %vm431_vm3, %v687_v1 }
 0x1e3   : > { %524 = vmatprep.mubr.bf16.mxu0 %v712_v0  ;;  %v414_v0 = vld [vmem:[%s823_s1 + $0x20] sm:$0xf] }
 0x2b5   : > { %v469_v3 = vpop.f32.mrb[4].mxu0 }
 0x2b6   : > { %v470_v4 = vadd.f32 %v469_v3, %v419_v2  ;;  %v471_v5 = vpop.f32.mrb[5].mxu0 }
 0x2b7   : > { %v472_v7 = vadd.f32 %v471_v5, %v419_v2  ;;  %v473_v8 = vpop.f32.mrb[6].mxu0 }
 0x2b8   : > { %v474_v9 = vadd.f32 %v473_v8, %v424_v6  ;;  %v475_v10 = vpop.f32.mrb[7].mxu0  ;;  %v478_v12 = vmax.f32 %v470_v4, 0.0 }
 0x2b9   : > { %v476_v11 = vadd.f32 %v475_v10, %v424_v6  ;;  %v479_v14 = vmax.f32 %v472_v7, 0.0 }
 0x2ba   : > { %v480_v13 = vmax.f32 %v474_v9, 0.0 }
 0x2bb   : > { %v481_v15 = vmax.f32 %v476_v11, 0.0 }
 0x2bc   : > { %v482_v16 = vpack.c.bf16 %v480_v13, %v478_v12 }
 0x2bd   : > { %v483_v17 = vpack.c.bf16 %v481_v15, %v479_v14 }
 0x2bf   : > { %492 = vmatprep.subr.bf16.mxu0 %v483_v17 }
 0x2c0   : > { %493 = vmatpush1.bf16.msra.mxu0 %v482_v16 }
 0x2c3   : > { %650 = vmatmul.mubr.msk.bf16.vlgmr.msra.gmra.mrb[8].mxu0 %vm338_vm2, %v414_v0 }
 0x396   : > { %v526_v19 = vpop.f32.mrb[8].mxu0 }
 0x397   : > { %v527_v20 = vadd.f32 %v526_v19, %v487_v18  ;;  %v528_v21 = vpop.f32.mrb[9].mxu0 }
 0x398   : > { %v529_v22 = vadd.f32 %v528_v21, %v487_v18  ;;  %v530_v23 = vpop.f32.mrb[10].mxu0 }
 0x399   : > { %v533_v24 = vmax.f32 %v527_v20, 0.0  ;;  %v531_v25 = vpop.f32.mrb[11].mxu0 }
 0x39a   : > { %v534_v26 = vmax.f32 %v529_v22, 0.0 }
 0x39c   : > { %v656_v27 = vpack.c.bf16 %v534_v26, %v533_v24 }
 0x39e   : > { %543 = vst [vmem:[%s208_s28] sm:$0xff] %v656_v27 }
 0x39f PF: > { %s13_s14 = sadd.s32 1, %s710_s14   ;;  %s826_s12 = smov %s706_s13 }
 0x3a0   : > { %p10_p5 = scmp.ge.s32.totalorder %s13_s14, 4   ;;  %s827_s13 = smov %s829_s15 }
 0x3a2   :  { %12 = sbr.rel (!%p10_p5) target bundleno = 2 (0x2), region = 62 }

</bundles_post_ra>
